<compile_context>
chip_gen: v6e
topology: v6e:2x2x1
jax: 0.10.0
libtpu: 0.0.40
codegen_flags: <defaults>
</compile_context>

<pallas_src>
import math

import jax
import jax.numpy as jnp
from jax.experimental import pallas as pl
from jax.experimental.pallas import tpu as pltpu


_LANE = 512                       # lane-axis width of the flattened slab (x128)
_TILE_BYTES = 6 * 1024 * 1024     # ~6 MiB per input per grid step
_CHUNK_ROWS = 256                 # in-kernel reduction chunk (<= 512 KiB f32 temp)
_SMALL_BYTES = 1 * 1024 * 1024    # below this, plain JAX is faster (launch cost)
_VMEM_LIMIT = 48 * 1024 * 1024    # 2 inputs x 2 buffers x 6 MiB + slack


def _plain_sq_sum(x, y):
    """sum((x - y)^2) in f32, plain JAX (used for tails / tiny inputs)."""
    d = x.astype(jnp.float32) - y.astype(jnp.float32)
    return jnp.sum(d * d)


def _make_mse_kernel(chunk_rows, n_chunks):
    """Kernel accumulating per-lane partial sums of (x-y)^2 into (8, LANE)."""

    def kernel(x_ref, y_ref, out_ref):
        @pl.when(pl.program_id(1) == 0)
        def _():
            out_ref[...] = jnp.zeros_like(out_ref)

        def body(c, acc):
            r0 = pl.multiple_of(c * chunk_rows, chunk_rows)
            xs = x_ref[pl.ds(r0, chunk_rows), :].astype(jnp.float32)
            ys = y_ref[pl.ds(r0, chunk_rows), :].astype(jnp.float32)
            d = xs - ys
            # (chunk, LANE) -> (chunk//8, 8, LANE) is tile-aligned (last two
            # dims match the native (8,128) tiling), so the axis-0 sum is pure
            # VPU vreg adds: no cross-lane / XLU work in the hot loop.
            return acc + (d * d).reshape(chunk_rows // 8, 8, _LANE).sum(axis=0)

        acc = jax.lax.fori_loop(
            0, n_chunks, body, jnp.zeros((8, _LANE), jnp.float32))
        out_ref[...] += acc

    return kernel


def weighted_mse_loss(x, y, weight=1.0, *, block_rows=None):
    """weight * mean((x - y)^2), streamed through a Pallas TPU kernel.

    x, y: arrays of identical shape (any rank / dtype; bf16 passes through
          uncast to halve HBM traffic, squared-diff is computed in f32).
    weight: python float or 0-d array (the LossModule `weight` buffer).
    block_rows: optional override of the row-tile size (testing / tuning);
          when given, the small-input fast path is bypassed.
    """
    assert x.shape == y.shape, (x.shape, y.shape)
    n = x.size
    w = jnp.asarray(weight, dtype=jnp.float32)
    if n == 0:
        return w * jnp.float32(0.0)

    itemsize = jnp.dtype(x.dtype).itemsize
    sub = max(8, 32 // itemsize)          # sublane multiple: 8 (f32) / 16 (bf16)
    inv_n = jnp.float32(1.0 / float(n))

    rows = n // _LANE                     # whole 512-lane rows

    if block_rows is None:
        if n * itemsize < _SMALL_BYTES or rows < sub:
            return w * (_plain_sq_sum(x, y) * inv_n)
        target = max(sub, (_TILE_BYTES // (_LANE * itemsize)) // sub * sub)
    else:
        target = max(sub, int(block_rows) // sub * sub)

    tr = min(target, (rows // sub) * sub)
    if tr < sub or rows // tr == 0:
        return w * (_plain_sq_sum(x, y) * inv_n)

    nblk = rows // tr                     # whole tiles
    p_dim = 2 if nblk >= 2 else 1         # unconditional megacore split (v7x)
    k_dim = nblk // p_dim
    covered_rows = p_dim * k_dim * tr
    covered = covered_rows * _LANE        # elements handled by the kernel

    xf = x.reshape(-1)
    yf = y.reshape(-1)
    # Lane-dense 2-D view of the whole-row prefix. Zero-copy (bitcast reshape)
    # when n is a multiple of _LANE; otherwise a single prefix slice.
    if rows * _LANE == n:
        x2 = xf.reshape(rows, _LANE)
        y2 = yf.reshape(rows, _LANE)
    else:
        x2 = xf[: rows * _LANE].reshape(rows, _LANE)
        y2 = yf[: rows * _LANE].reshape(rows, _LANE)

    ch = math.gcd(tr, _CHUNK_ROWS)        # chunk rows (multiple of sublane)
    n_chunks = tr // ch

    in_map = lambda p, k: (p * k_dim + k, 0)      # contiguous row blocks

    partials = pl.pallas_call(
        _make_mse_kernel(ch, n_chunks),
        out_shape=jax.ShapeDtypeStruct((p_dim * 8, _LANE), jnp.float32),
        grid_spec=pltpu.PrefetchScalarGridSpec(
            num_scalar_prefetch=0,
            grid=(p_dim, k_dim),
            in_specs=[
                pl.BlockSpec((tr, _LANE), in_map),
                pl.BlockSpec((tr, _LANE), in_map),
            ],
            # Output block constant along k => resident accumulator per p.
            out_specs=pl.BlockSpec((8, _LANE), lambda p, k: (p, 0)),
        ),
        compiler_params=pltpu.CompilerParams(
            dimension_semantics=("parallel", "arbitrary"),
            vmem_limit_bytes=_VMEM_LIMIT,
        ),
    )(x2, y2)

    total = jnp.sum(partials)
    if covered < n:
        # Remainder (< 2 tiles + sub-lane tail): plain JAX, also HBM-bound.
        total = total + _plain_sq_sum(xf[covered:], yf[covered:])

    return w * (total * inv_n)


class MSELossModuleJAX:
    """JAX mirror of LossModule, concretized to weight * MSE(input, target).

    Mirrors the PyTorch module's `weight` buffer + decay_weight() semantics.
    """
    # TODO(synk): LossModule.forward is abstract in the PyTorch spec; it is
    # concretized here as weight * mean((info[input_key] - info[target_key])^2).
    # decay_weight mutates Python state each forward and is not jit/scan-safe.

    def __init__(self, input_key, target_key, name, weight=1.0, decay=1.0):
        self.input_key = input_key
        self.target_key = target_key
        self.name = name
        self.decay = float(decay)
        self.master_weight = float(weight)
        self.weight = jnp.asarray(float(weight), dtype=jnp.float32)  # buffer

    def decay_weight(self):
        if self.decay != 1.0:
            self.weight = self.weight * self.decay
        elif self.decay == 1.0 and float(self.weight) != self.master_weight:
            self.weight = jnp.asarray(self.master_weight, dtype=jnp.float32)

    def forward(self, info):
        loss = weighted_mse_loss(info[self.input_key], info[self.target_key],
                                 weight=self.weight)
        self.decay_weight()
        return loss

    __call__ = forward


if __name__ == "__main__":
    key = jax.random.PRNGKey(0)
    k1, k2 = jax.random.split(key)

    # 1) Audio-like small shapes (module API, small-input fast path).
    B, C, T = 2, 4, 256
    decoded = jax.random.normal(k1, (B, C, T), dtype=jnp.float32)
    reals = jax.random.normal(k2, (B, C, T), dtype=jnp.float32)
    module = MSELossModuleJAX("decoded", "reals", name="mse_loss",
                              weight=0.25, decay=1.0)
    loss = jax.block_until_ready(module({"decoded": decoded, "reals": reals}))
    ref = 0.25 * jnp.mean((decoded - reals) ** 2)
    assert jnp.allclose(loss, ref, rtol=1e-5, atol=1e-6), (loss, ref)

    # 2) Kernel path, forced via block_rows: even tile count, p_dim=2 megacore
    #    split, whole input covered by the grid (no tail).
    k3, k4 = jax.random.split(k2)
    xa = jax.random.normal(k3, (2, 4, 8192), dtype=jnp.float32)
    ya = jax.random.normal(k4, (2, 4, 8192), dtype=jnp.float32)
    loss2 = jax.block_until_ready(weighted_mse_loss(xa, ya, weight=1.5,
                                                    block_rows=32))
    ref2 = 1.5 * jnp.mean((xa - ya) ** 2)
    assert jnp.allclose(loss2, ref2, rtol=1e-5, atol=1e-6), (loss2, ref2)

    # 3) Kernel path with odd tile count + non-512-multiple size: exercises
    #    the unconditional p_dim=2 split, the prefix-slice view, the chunked
    #    fori_loop reduction, and the plain-JAX tail.
    k5, k6 = jax.random.split(k4)
    xb = jax.random.normal(k5, (2, 3, 8000), dtype=jnp.float32)
    yb = jax.random.normal(k6, (2, 3, 8000), dtype=jnp.float32)
    loss3 = jax.block_until_ready(weighted_mse_loss(xb, yb, weight=0.75,
                                                    block_rows=24))
    ref3 = 0.75 * jnp.mean((xb - yb) ** 2)
    assert jnp.allclose(loss3, ref3, rtol=1e-5, atol=1e-6), (loss3, ref3)

    # 4) bf16 input through the default (no-override) kernel path.
    k7, k8 = jax.random.split(k6)
    xc = jax.random.normal(k7, (2, 4, 65536), dtype=jnp.bfloat16)
    yc = jax.random.normal(k8, (2, 4, 65536), dtype=jnp.bfloat16)
    loss4 = jax.block_until_ready(weighted_mse_loss(xc, yc, weight=0.5))
    ref4 = 0.5 * jnp.mean((xc.astype(jnp.float32) - yc.astype(jnp.float32)) ** 2)
    assert jnp.allclose(loss4, ref4, rtol=1e-3, atol=1e-4), (loss4, ref4)

    print("KERNEL_OK")
</pallas_src>

<mosaic_0001>
module attributes {stable_mosaic.version = 11 : i64} {
  func.func @kernel(%arg0: i32, %arg1: i32, %arg2: memref<32x512xf32, #tpu.memory_space<vmem>>, %arg3: memref<32x512xf32, #tpu.memory_space<vmem>>, %arg4: memref<8x512xf32, #tpu.memory_space<vmem>>) attributes {dimension_semantics = [#tpu.dimension_semantics<parallel>, #tpu.dimension_semantics<arbitrary>], iteration_bounds = array<i64: 2, 2>, scalar_prefetch = 0 : i64, scratch_operands = 0 : i64, tpu.core_type = #tpu.core_type<tc>, window_params = [{transform_indices = @transform_0, window_bounds = array<i64: 32, 512>}, {transform_indices = @transform_1, window_bounds = array<i64: 32, 512>}, {transform_indices = @transform_2, window_bounds = array<i64: 8, 512>}]} {
    %c0_i32 = arith.constant 0 : i32
    %0 = arith.cmpi eq, %arg1, %c0_i32 : i32
    %1 = arith.extui %0 : i1 to i32
    %c0_i32_0 = arith.constant 0 : i32
    %2 = arith.cmpi ne, %1, %c0_i32_0 : i32
    scf.if %2 {
      %cst_8 = arith.constant 0.000000e+00 : f32
      %18 = vector.broadcast %cst_8 : f32 to vector<8x512xf32>
      %c0_9 = arith.constant 0 : index
      %c0_10 = arith.constant 0 : index
      %19 = vector.load %arg4[%c0_9, %c0_10] : memref<8x512xf32, #tpu.memory_space<vmem>>, vector<8x512xf32>
      tpu.vector_store %arg4[%c0_9, %c0_10], %18 {strides = array<i32>} : memref<8x512xf32, #tpu.memory_space<vmem>>, vector<8x512xf32>,
    } else {
    }
    %cst = arith.constant 0.000000e+00 : f32
    %3 = vector.broadcast %cst : f32 to vector<8x512xf32>
    %c0_i32_1 = arith.constant 0 : i32
    %c32_i32 = arith.constant 32 : i32
    %4 = arith.muli %c0_i32_1, %c32_i32 : i32
    %5 = tpu.assume_multiple %4, 32 : i32
    %6 = arith.index_cast %5 : i32 to index
    %c0 = arith.constant 0 : index
    %7 = vector.load %arg2[%6, %c0] : memref<32x512xf32, #tpu.memory_space<vmem>>, vector<32x512xf32>
    %8 = arith.index_cast %5 : i32 to index
    %c0_2 = arith.constant 0 : index
    %9 = vector.load %arg3[%8, %c0_2] : memref<32x512xf32, #tpu.memory_space<vmem>>, vector<32x512xf32>
    %10 = arith.subf %7, %9 : vector<32x512xf32>
    %11 = arith.mulf %10, %10 : vector<32x512xf32>
    %12 = vector.shape_cast %11 : vector<32x512xf32> to vector<4x8x512xf32>
    %cst_3 = arith.constant dense<0.000000e+00> : vector<8x512xf32>
    %13 = vector.multi_reduction <add>, %12, %cst_3 [0] : vector<4x8x512xf32> to vector<8x512xf32>
    %14 = arith.addf %3, %13 : vector<8x512xf32>
    %c1_i32 = arith.constant 1 : i32
    %c0_4 = arith.constant 0 : index
    %c0_5 = arith.constant 0 : index
    %15 = vector.load %arg4[%c0_4, %c0_5] : memref<8x512xf32, #tpu.memory_space<vmem>>, vector<8x512xf32>
    %16 = arith.addf %15, %14 : vector<8x512xf32>
    %c0_6 = arith.constant 0 : index
    %c0_7 = arith.constant 0 : index
    %17 = vector.load %arg4[%c0_6, %c0_7] : memref<8x512xf32, #tpu.memory_space<vmem>>, vector<8x512xf32>
    tpu.vector_store %arg4[%c0_6, %c0_7], %16 {strides = array<i32>} : memref<8x512xf32, #tpu.memory_space<vmem>>, vector<8x512xf32>,
    return
  }
  func.func @transform_0(%arg0: i32, %arg1: i32) -> (i32, i32) {
    %c2_i32 = arith.constant 2 : i32
    %0 = arith.muli %arg0, %c2_i32 : i32
    %1 = arith.addi %0, %arg1 : i32
    %c0_i32 = arith.constant 0 : i32
    %c0_i32_0 = arith.constant 0 : i32
    return %1, %c0_i32 : i32, i32
  }
  func.func @transform_1(%arg0: i32, %arg1: i32) -> (i32, i32) {
    %c2_i32 = arith.constant 2 : i32
    %0 = arith.muli %arg0, %c2_i32 : i32
    %1 = arith.addi %0, %arg1 : i32
    %c0_i32 = arith.constant 0 : i32
    %c0_i32_0 = arith.constant 0 : i32
    return %1, %c0_i32 : i32, i32
  }
  func.func @transform_2(%arg0: i32, %arg1: i32) -> (i32, i32) {
    %c0_i32 = arith.constant 0 : i32
    %c0_i32_0 = arith.constant 0 : i32
    return %arg0, %c0_i32 : i32, i32
  }
}

</mosaic_0001>

<bundles_post_ra>
// kernel: tpu_custom_call.1
= control target key start
LH: loop header
LB: loop body
LE: loop exit
PB: predicated region body
PF: predicated region fallthrough
CT: control target
= control target key end

     0   :  { %s1076_s0 = inlined_call_operand.hbm [shape: f32[128,512], index: 0, kind: input, shape index: {}]   ;;  %s1077_s1 = inlined_call_operand.hbm [shape: f32[128,512], index: 1, kind: input, shape index: {}]   ;;  %s1078_s2 = inlined_call_operand.hbm [shape: f32[16,512], index: 2, kind: output, shape index: {}]  }
   0x1   :  { %1083 = sst [smem:[#allocation16_spill]] %s1076_s0 }
   0x2   :  { %7 = vsyncpa [#allocation3], 0 }
   0x3   :  { %9 = vsyncpa [#allocation3 + $0x1], 0 }
   0x4   :  { %10 = vsyncpa [#allocation6], 0 }
   0x5   :  { %12 = vsyncpa [#allocation6 + $0x1], 0 }
   0x6   :  { %13 = vsyncpa [#allocation4], 0 }
   0x7   :  { %15 = vsyncpa [#allocation4 + $0x1], 0  ;;  %s808_s9 = smov 0   ;;  %s810_s10 = smov 0  }
   0x8   :  { %s812_s11 = smov 0   ;;  %s814_s12 = smov 0  }
   0x9   :  { %s816_s13 = smov 0   ;;  %s818_s14 = smov 0  }
   0xa   :  { %s820_s15 = smov 0   ;;  %s822_s16 = smov 0  }
   0xb   :  { %s824_s17 = smov 0   ;;  %s826_s18 = smov 0  }
   0xc   :  { %s828_s19 = smov 0  }
   0xd LB: > { %1084 = sst [smem:[#allocation11_spill]] %s777_s17  ;;  %s462_s20 = sadd.s32 4294967295, %s785_s19   ;;  %s785_s19 = sphi %s828_s19, %s21_s19   ;;  %s781_s18 = sphi %s826_s18, %s1100_s18   ;;  %s777_s17 = sphi %s824_s17, %s1099_s17   ;;  %s773_s16 = sphi %s822_s16, %s1098_s16   ;;  %s769_s15 = sphi %s820_s15, %s1097_s15   ;;  %s765_s14 = sphi %s818_s14, %s1106_s14   ;;  %s761_s13 = sphi %s816_s13, %s1105_s13   ;;  %s757_s12 = sphi %s814_s12, %s1104_s12   ;;  %s753_s11 = sphi %s812_s11, %s1103_s11   ;;  %s749_s10 = sphi %s810_s10, %s1102_s10   ;;  %s745_s9 = sphi %s808_s9, %s1101_s9  }
   0xe   : > { %1085 = sst [smem:[#allocation12_spill]] %s781_s18  ;;  %s463_s21 = sadd.s32 4294967294, %s785_s19  }
   0xf   : > { %s30_s22 = sadd.s32 1, %s777_s17  ;;  %s33_s23 = sadd.s32 1, %s781_s18 }
  0x10   : > { %p31_p0 = scmp.ge.s32.totalorder %s30_s22, 2  ;;  %s464_s24 = sshll.u32 %s781_s18, 1 }
  0x11   : > { %s867_s25 = sadd.s32 %s777_s17, %s464_s24  ;;  %s44_s26 = sadd.s32 1, %s765_s14 }
  0x12   : > { %s1108_s22 = smov (%p31_p0, %s30_s22), 0  ;;  %s1110_s23 = smov (!%p31_p0, %s33_s23), %s781_s18 }
  0x13   : > { %1086 = sst [smem:[#allocation13_spill]] %s1108_s22  ;;  %p51_p1 = scmp.ne.s32.totalorder %s765_s14, %s761_s13 }
  0x14   : > { %p52_p2 = scmp.eq.s32.totalorder %s785_s19, 0  ;;  %p35_p3 = scmp.ge.s32.totalorder %s1110_s23, 2 }
  0x15   : > { %p57_p4 = scmp.ne.s32.totalorder %s761_s13, %s757_s12  ;;  %p58_p6 = scmp.eq.s32.totalorder %s462_s20, 0 }
  0x16   : > { %p877_p5 = por %p52_p2, %p51_p1  ;;  %s1112_s23 = smov (%p35_p3, %s1110_s23), 0 }
  0x17   : > { %1088 = sst [smem:[#allocation14_spill]] %s1112_s23  ;;  %p883_p7 = por %p58_p6, %p57_p4 }
  0x18   : > { %s100_s29 = sadd.s32 1, %s753_s11  ;;  %s465_s30 = sshll.u32 %s1112_s23, 1 }
  0x19   : > { %s97_s3 = ssub.s32 %s781_s18, %s1112_s23  ;;  %s40_s4 = sadd.s32 %s465_s30, %s1108_s22 }
  0x1a   : > { %p98_p8 = scmp.eq.s32.totalorder %s97_s3, 0  ;;  %s41_s5 = ssub.s32 %s867_s25, %s40_s4 }
  0x1b   : > { %p110_p9 = scmp.ne.s32.totalorder %s753_s11, %s749_s10  ;;  %p42_p10 = scmp.eq.s32.totalorder %s41_s5, 0 }
  0x1c   : > { %p111_p11 = scmp.eq.s32.totalorder %s462_s20, 3  ;;  %p116_p13 = scmp.ne.s32.totalorder %s749_s10, %s745_s9 }
  0x1d   : > { %s896_s6 = scalar_select %p98_p8, %s753_s11, %s100_s29  }
  0x1e   : > { %s899_s7 = scalar_select %p42_p10, %s765_s14, %s44_s26  }
  0x1f   : > { %p901_p12 = por %p111_p11, %p110_p9  ;;  %p117_p0 = scmp.eq.s32.totalorder %s463_s21, 3 }
  0x20   : > { %1090 = sst [smem:[#allocation15_spill]] %s899_s7  ;;  %p512_p1 = scmp.lt.s32.totalorder %s785_s19, 4 }
  0x21   : > { %s911_s12 = sand.u32 1, %s765_s14   ;;  %p913_p2 = por %p117_p0, %p116_p13 }
  0x22   : > { %s470_s20 = sshll.u32 %s911_s12, 7  ;;  %s491_s26 = sshll.u32 %s867_s25, 11 }
  0x23   : > { %s1093_s0 = sld [smem:[#allocation16_spill]]  ;;  %s141_s4 = scalar_lea.vmem [#allocation2], %s470_s20 }
  0x24   : > { %s151_s5 = sshll.u32 %s141_s4, 4  ;;  %p926_p3 = pnand %p512_p1, %p877_p5  ;;  %s152_s5 = int_to_ptr.vmem [resolvable:$true] %s151_s5 }
  0x25   : > { %s138_s23 = scalar_lea.sflag [#allocation3], %s911_s12  ;;  %s618_s22 = scalar_lea.vmem %s152_s5, 2048 }
  0x26   : > { %p607_p4 = pneg %p926_p3  ;;  %p619_p6 = scmp.ne.s32.totalorder %s152_s5, %s618_s22 }
  0x27   : > { %s787_s25 = smov [#allocation2]  }
  0x28   : > { %p621_p8 = pnand %p619_p6, %p607_p4  ;;  %s623_s29 = sshll.u32 %s787_s25, 4  ;;  %s624_s29 = int_to_ptr.vmem [resolvable:$false] %s623_s29 }
  0x29   : > { %s150_s3 = scalar_lea.hbm %s1093_s0, %s491_s26  ;;  %s625_s27 = scalar_lea.vmem %s624_s29, 4096 }
  0x2a   : > { %p622_p9 = pneg %p621_p8  ;;  %p626_p5 = scmp.lt.s32.totalorder %s152_s5, %s624_s29 }
  0x2b   : > { %p627_p10 = scmp.lt.s32.totalorder %s625_s27, %s618_s22 }
  0x2d   : > { %p628_p11 = por %p627_p10, %p626_p5 }
  0x2f   : > { %p629_p13 = pnand %p628_p11, %p622_p9 }
  0x31   : > { %632 = shalt.err (!%p629_p13)
}
  0x32   : > { %s788_s30 = smov 512   ;;  %s789_s4 = smov 32  }
  0x33   : > { %504 = dma.hbm_to_vmem [thread:$0]  (!%p926_p3), %s150_s3, 2048, %s152_s5, %s138_s23, %s788_s30, %s788_s30, %s789_s4  }
  0x34   : > { %p480_p0 = scmp.ge.s32.totalorder %s785_s19, 1  ;;  %p183_p1 = scmp.lt.s32.totalorder %s785_s19, 5 }
  0x35   : > { %s174_s27 = scalar_lea.hbm %s1077_s1, %s491_s26  ;;  %s165_s0 = scalar_lea.vmem [#allocation5], %s470_s20 }
  0x36   : > { %p940_p6 = pnand %p480_p0, %p183_p1  ;;  %s175_s18 = sshll.u32 %s165_s0, 4  ;;  %s176_s18 = int_to_ptr.vmem [resolvable:$true] %s175_s18 }
  0x37   : > { %s162_s17 = scalar_lea.sflag [#allocation6], %s911_s12  ;;  %s646_s7 = scalar_lea.vmem %s176_s18, 2048 }
  0x38   : > { %p647_p8 = scmp.ne.s32.totalorder %s176_s18, %s646_s7  ;;  %s790_s23 = smov [#allocation5]  }
  0x39   : > { %s651_s3 = sshll.u32 %s790_s23, 4  ;;  %s652_s3 = int_to_ptr.vmem [resolvable:$false] %s651_s3 }
  0x3a   : > { %p649_p9 = pnand %p647_p8, %p607_p4  ;;  %s653_s5 = scalar_lea.vmem %s652_s3, 4096 }
  0x3b   : > { %p654_p10 = scmp.lt.s32.totalorder %s176_s18, %s652_s3  ;;  %p655_p11 = scmp.lt.s32.totalorder %s653_s5, %s646_s7 }
  0x3c   : > { %p650_p5 = pneg %p649_p9 }
  0x3d   : > { %p656_p13 = por %p655_p11, %p654_p10 }
  0x3f   : > { %p657_p0 = pnand %p656_p13, %p650_p5 }
  0x41   : > { %660 = shalt.err (!%p657_p0)
}
  0x42   : > { %507 = dma.hbm_to_vmem [thread:$0]  (!%p926_p3), %s174_s27, 2048, %s176_s18, %s162_s17, %s788_s30, %s788_s30, %s789_s4  }
  0x43   : > { %187 = sbr.rel (%p940_p6) target bundleno = 124 (0x7c), region = 28  ;;  %s189_s0 = sand.u32 (!%p940_p6), 1, %s761_s13  }
  0x44   : > { %s481_s12 = sshll.u32 (!%p940_p6), %s189_s0, 7  ;;  %s190_s20 = scalar_lea.sflag (!%p940_p6), [#allocation3], %s189_s0 }
  0x45   : > { %s958_s26 = scalar_lea.vmem (!%p940_p6), [#allocation2], %s481_s12 }
  0x48   : > { %732 = dma.done.wait (%p883_p7), %s190_s20, 2048  }
  0x49   : > { %734 = vsyncadd (%p883_p7), %s190_s20, 4294965248  ;;  %s199_s7 = scalar_lea.sflag [#allocation6], %s189_s0  ;;  %s964_s22 = scalar_lea.vmem [#allocation5], %s481_s12 }
  0x4a   : > { %736 = dma.done.wait (%p883_p7), %s199_s7, 2048  }
  0x4b   : > { %738 = vsyncadd (%p883_p7), %s199_s7, 4294965248  ;;  %s225_s17 = sand.u32 1, %s749_s10   ;;  %p484_p3 = scmp.ne.s32.totalorder %s769_s15, 0 }
  0x4c   : > { %s483_s18 = sshll.u32 %s225_s17, 5 }
  0x4d   : > { %s973_s21 = scalar_lea.vmem [#allocation7], %s483_s18  ;;  %237 = sbr.rel (%p484_p3) target bundleno = 85 (0x55), region = 40 }
  0x52   : > { %v791_v0 = vmov 0.0  }
  0x53   : > { %238 = vst [vmem:[%s973_s21] sm:$0xff] %v791_v0  ;;  %239 = vst [vmem:[%s973_s21 + $0x8] sm:$0xff] %v791_v0 }
  0x54   : > { %240 = vst [vmem:[%s973_s21 + $0x10] sm:$0xff] %v791_v0  ;;  %241 = vst [vmem:[%s973_s21 + $0x18] sm:$0xff] %v791_v0 }
  0x55 PF: > { %v245_v1 = vld [vmem:[%s958_s26] sm:$0xff]  ;;  %v246_v13 = vld [vmem:[%s958_s26 + $0x8] sm:$0xff]  ;;  %v247_v30 = vld [vmem:[%s958_s26 + $0x10] sm:$0xff]  ;;  %s494_s15 = sshll.u32 %s773_s16, 9  ;;  %s354_s28 = sshll.u32 %s973_s21, 4  ;;  %s355_s28 = int_to_ptr.vmem [resolvable:$true] %s354_s28 }
  0x56   : > { %v249_v2 = vld [vmem:[%s958_s26 + $0x20] sm:$0xff]  ;;  %v250_v14 = vld [vmem:[%s958_s26 + $0x28] sm:$0xff]  ;;  %v251_v31 = vld [vmem:[%s958_s26 + $0x30] sm:$0xff]  ;;  %s352_s25 = scalar_lea.hbm %s1078_s2, %s494_s15  ;;  %s340_s29 = scalar_lea.sflag [#allocation4], %s225_s17 }
  0x57   : > { %v253_v3 = vld [vmem:[%s958_s26 + $0x40] sm:$0xff]  ;;  %v254_v15 = vld [vmem:[%s958_s26 + $0x48] sm:$0xff]  ;;  %v255_v32 = vld [vmem:[%s958_s26 + $0x50] sm:$0xff]  ;;  %s661_s27 = scalar_lea.vmem %s355_s28, 512  ;;  %s792_s23 = smov [#allocation7]  }
  0x58   : > { %v257_v4 = vld [vmem:[%s958_s26 + $0x60] sm:$0xff]  ;;  %v258_v18 = vld [vmem:[%s958_s26 + $0x68] sm:$0xff]  ;;  %v259_v35 = vld [vmem:[%s958_s26 + $0x70] sm:$0xff]  ;;  %p662_p7 = scmp.ne.s32.totalorder %s355_s28, %s661_s27  ;;  %s665_s3 = sshll.u32 %s792_s23, 4  ;;  %s666_s3 = int_to_ptr.vmem [resolvable:$false] %s665_s3 }
  0x59   : > { %v263_v5 = vld [vmem:[%s964_s22] sm:$0xff]  ;;  %v264_v19 = vld [vmem:[%s964_s22 + $0x8] sm:$0xff]  ;;  %v265_v36 = vld [vmem:[%s964_s22 + $0x10] sm:$0xff]  ;;  %s667_s16 = scalar_lea.vmem %s666_s3, 1024  ;;  %p668_p6 = scmp.lt.s32.totalorder %s355_s28, %s666_s3 }
  0x5a   : > { %v267_v6 = vld [vmem:[%s964_s22 + $0x20] sm:$0xff]  ;;  %v279_v9 = vsub.f32 %v245_v1, %v263_v5  ;;  %v268_v20 = vld [vmem:[%s964_s22 + $0x28] sm:$0xff]  ;;  %v280_v24 = vsub.f32 %v246_v13, %v264_v19  ;;  %v269_v37 = vld [vmem:[%s964_s22 + $0x30] sm:$0xff]  ;;  %v281_v44 = vsub.f32 %v247_v30, %v265_v36  ;;  %p663_p4 = pnand %p662_p7, %p901_p12  ;;  %p669_p8 = scmp.lt.s32.totalorder %s667_s16, %s661_s27 }
  0x5b   : > { %v271_v7 = vld [vmem:[%s964_s22 + $0x40] sm:$0xff]  ;;  %v283_v10 = vsub.f32 %v249_v2, %v267_v6  ;;  %v272_v22 = vld [vmem:[%s964_s22 + $0x48] sm:$0xff]  ;;  %v284_v25 = vsub.f32 %v250_v14, %v268_v20  ;;  %v273_v42 = vld [vmem:[%s964_s22 + $0x50] sm:$0xff]  ;;  %v285_v46 = vsub.f32 %v251_v31, %v269_v37 }
  0x5c   : > { %v275_v8 = vld [vmem:[%s964_s22 + $0x60] sm:$0xff]  ;;  %v287_v11 = vsub.f32 %v253_v3, %v271_v7  ;;  %v295_v16 = vmul.f32 %v279_v9, %v279_v9  ;;  %v276_v23 = vld [vmem:[%s964_s22 + $0x68] sm:$0xff]  ;;  %v288_v28 = vsub.f32 %v254_v15, %v272_v22  ;;  %v296_v33 = vmul.f32 %v280_v24, %v280_v24  ;;  %v277_v43 = vld [vmem:[%s964_s22 + $0x70] sm:$0xff]  ;;  %p664_p1 = pneg %p663_p4  ;;  %p670_p9 = por %p669_p8, %p668_p6 }
  0x5d   : > { %v291_v12 = vsub.f32 %v257_v4, %v275_v8  ;;  %v299_v17 = vmul.f32 %v283_v10, %v283_v10  ;;  %v292_v29 = vsub.f32 %v258_v18, %v276_v23  ;;  %v300_v34 = vmul.f32 %v284_v25, %v284_v25  ;;  %v327_v39 = vld [vmem:[%s973_s21] sm:$0xff]  ;;  %v248_v49 = vld [vmem:[%s958_s26 + $0x18] sm:$0xff]  ;;  %v328_v63 = vld [vmem:[%s973_s21 + $0x8] sm:$0xff] }
  0x5e   : > { %v303_v21 = vmul.f32 %v287_v11, %v287_v11  ;;  %v304_v40 = vmul.f32 %v288_v28, %v288_v28  ;;  %v289_v47 = vsub.f32 %v255_v32, %v273_v42  ;;  %v293_v48 = vsub.f32 %v259_v35, %v277_v43  ;;  %v252_v50 = vld [vmem:[%s958_s26 + $0x38] sm:$0xff]  ;;  %p671_p5 = pnand %p670_p9, %p664_p1 }
  0x5f   : > { %v307_v26 = vmul.f32 %v291_v12, %v291_v12  ;;  %v311_v27 = vadd.f32 %v299_v17, %v295_v16  ;;  %v308_v41 = vmul.f32 %v292_v29, %v292_v29  ;;  %v314_v45 = vadd.f32 %v300_v34, %v296_v33  ;;  %v256_v51 = vld [vmem:[%s958_s26 + $0x58] sm:$0xff]  ;;  %v329_v12 = vld [vmem:[%s973_s21 + $0x10] sm:$0xff] }
  0x60   : > { %v297_v53 = vmul.f32 %v281_v44, %v281_v44  ;;  %v260_v54 = vld [vmem:[%s958_s26 + $0x78] sm:$0xff]  ;;  %v301_v58 = vmul.f32 %v285_v46, %v285_v46  ;;  %v305_v59 = vmul.f32 %v289_v47, %v289_v47  ;;  %v309_v4 = vmul.f32 %v293_v48, %v293_v48 }
  0x61   : > { %v312_v38 = vadd.f32 %v311_v27, %v303_v21  ;;  %v266_v55 = vld [vmem:[%s964_s22 + $0x18] sm:$0xff]  ;;  %v315_v57 = vadd.f32 %v314_v45, %v304_v40 }
  0x62   : > { %v270_v56 = vld [vmem:[%s964_s22 + $0x38] sm:$0xff]  ;;  %v282_v0 = vsub.f32 %v248_v49, %v266_v55  ;;  %v317_v5 = vadd.f32 %v301_v58, %v297_v53 }
  0x63   : > { %v313_v52 = vadd.f32 %v312_v38, %v307_v26  ;;  %v274_v60 = vld [vmem:[%s964_s22 + $0x58] sm:$0xff]  ;;  %v286_v1 = vsub.f32 %v252_v50, %v270_v56  ;;  %v316_v3 = vadd.f32 %v315_v57, %v308_v41 }
  0x64   : > { %v278_v61 = vld [vmem:[%s964_s22 + $0x78] sm:$0xff]  ;;  %v290_v2 = vsub.f32 %v256_v51, %v274_v60  ;;  %v298_v7 = vmul.f32 %v282_v0, %v282_v0  ;;  %v318_v11 = vadd.f32 %v317_v5, %v305_v59 }
  0x65   : > { %v331_v62 = vadd.f32 %v327_v39, %v313_v52  ;;  %v294_v6 = vsub.f32 %v260_v54, %v278_v61  ;;  %v302_v8 = vmul.f32 %v286_v1, %v286_v1  ;;  %v332_v10 = vadd.f32 %v328_v63, %v316_v3  ;;  %v330_v18 = vld [vmem:[%s973_s21 + $0x18] sm:$0xff] }
  0x66   : > { %v306_v9 = vmul.f32 %v290_v2, %v290_v2  ;;  %v319_v15 = vadd.f32 %v318_v11, %v309_v4 }
  0x67   : > { %335 = vst [vmem:[%s973_s21] sm:$0xff] %v331_v62  ;;  %v310_v13 = vmul.f32 %v294_v6, %v294_v6  ;;  %v320_v14 = vadd.f32 %v302_v8, %v298_v7  ;;  %336 = vst [vmem:[%s973_s21 + $0x8] sm:$0xff] %v332_v10 }
  0x68   : > { %v333_v17 = vadd.f32 %v329_v12, %v319_v15 }
  0x69   : > { %v321_v16 = vadd.f32 %v320_v14, %v306_v9 }
  0x6a   : > { %337 = vst [vmem:[%s973_s21 + $0x10] sm:$0xff] %v333_v17 }
  0x6b   : > { %v322_v19 = vadd.f32 %v321_v16, %v310_v13 }
  0x6d   : > { %v334_v20 = vadd.f32 %v330_v18, %v322_v19 }
  0x6f   : > { %338 = vst [vmem:[%s973_s21 + $0x18] sm:$0xff] %v334_v20 }
  0x70   : > { %674 = shalt.err (!%p671_p5)
}
  0x71   : > { %s675_s5 = scalar_lea.hbm %s352_s25, 512  ;;  %s679_s20 = scalar_lea.hbm %s1078_s2, 1024 }
  0x72   : > { %p676_p10 = scmp.ne.s32.totalorder %s352_s25, %s675_s5  ;;  %p680_p0 = scmp.lt.s32.totalorder %s352_s25, %s1078_s2 }
  0x73   : > { %p681_p3 = scmp.lt.s32.totalorder %s679_s20, %s675_s5 }
  0x74   : > { %p677_p11 = pnand %p676_p10, %p901_p12 }
  0x75   : > { %p682_p7 = por %p681_p3, %p680_p0 }
  0x76   : > { %p678_p13 = pneg %p677_p11 }
  0x78   : > { %p683_p4 = pnand %p682_p7, %p678_p13 }
  0x7a   : > { %686 = shalt.err (!%p683_p4)
}
  0x7b   : > { %499 = dma.vmem_to_hbm [thread:$0]  (%p901_p12), %s355_s28, 512, %s352_s25, %s340_s29  }
  0x7c PF: > { %p513_p1 = scmp.ge.s32.totalorder %s785_s19, 2  ;;  %s366_s22 = sand.u32 1, %s745_s9  }
  0x7d   : > { %s367_s17 = scalar_lea.sflag [#allocation4], %s366_s22 }
  0x7e   : > { %p509_p6 = pnand %p513_p1, %p913_p2 }
  0x80   : > { %p510_p8 = pneg %p509_p6 }
  0x82   : > { %740 = dma.done.wait (%p510_p8), %s367_s17, 512  }
  0x83   : > { %742 = vsyncadd (%p510_p8), %s367_s17, 4294966784  ;;  %s21_s19 = sadd.s32 1, %s785_s19   ;;  %s1096_s8 = sld [smem:[#allocation15_spill]] }
  0x84   : > { %p18_p9 = scmp.ge.s32.totalorder %s21_s19, 6   ;;  %s1097_s15 = sld [smem:[#allocation11_spill]] }
  0x85   : > { %s1098_s16 = sld [smem:[#allocation12_spill]]  ;;  %s1101_s9 = smov %s749_s10 }
  0x86   : > { %s1099_s17 = sld [smem:[#allocation13_spill]]  ;;  %s1102_s10 = smov %s753_s11 }
  0x87   : > { %s1100_s18 = sld [smem:[#allocation14_spill]]  ;;  %s1103_s11 = smov %s896_s6 }
  0x88   : > { %s1104_s12 = smov %s761_s13  ;;  %s1105_s13 = smov %s765_s14 }
  0x89   : > { %s1106_s14 = smov %s1096_s8  ;;  %20 = sbr.rel (!%p18_p9) target bundleno = 13 (0xd), region = 92 }
  0x8e   :  { %372 = vsyncpa [#allocation3], 1 }
  0x8f   :  { %374 = vsyncpa [#allocation3 + $0x1], 1 }
  0x90   :  { %375 = vsyncpa [#allocation6], 1 }
  0x91   :  { %377 = vsyncpa [#allocation6 + $0x1], 1 }
  0x92   :  { %378 = vsyncpa [#allocation4], 1 }
  0x93   :  { %380 = vsyncpa [#allocation4 + $0x1], 1 }

</bundles_post_ra>
